<compile_context>
chip_gen: v7x
topology: tpu7x:2x2x1
jax: 0.10.0
libtpu: 0.0.40
codegen_flags: <defaults>
</compile_context>

<pallas_src>
import functools

import jax
import jax.numpy as jnp
from jax.experimental import pallas as pl
from jax.experimental.pallas import tpu as pltpu


LANE = 128  # TPU vreg lane width


def _attention_kernel(x_ref, wqkv_ref, mask_ref, o_ref, *, head_size):
    x = x_ref[...]         # (B*T, C)
    wqkv = wqkv_ref[...]   # (C, Np)  with Np >= 3*head_size, lane-dense (multiple of 128)

    # Single fused, lane-dense QKV projection on the MXU.
    qkv = jnp.dot(x, wqkv, preferred_element_type=jnp.float32)   # (B*T, Np)
    q = qkv[:, 0:head_size]                                      # (B*T, H)
    k = qkv[:, head_size:2 * head_size]                          # (B*T, H)

    scale = jnp.float32(head_size) ** jnp.float32(-0.5)

    # q @ k^T without materializing the transpose: contract over the head dim.
    wei = jax.lax.dot_general(
        q, k,
        dimension_numbers=(((1,), (1,)), ((), ())),
        preferred_element_type=jnp.float32,
    ) * scale                                                    # (B*T, B*T)

    # Block-diagonal causal mask: attend only within the same batch element and
    # only to key positions <= the query position (analogue of the tril buffer).
    wei = jnp.where(mask_ref[...] != 0, wei, -jnp.inf)

    # Numerically stable softmax; approx reciprocal runs on the (otherwise idle) EUP.
    wei_max = jnp.max(wei, axis=-1, keepdims=True)
    p = jnp.exp(wei - wei_max)
    denom = jnp.sum(p, axis=-1, keepdims=True)
    p = p * pl.reciprocal(denom, approx=True)

    # TODO(synk): nn.Dropout is identity in eval mode; training-mode dropout
    # (pltpu.prng_seed + pltpu.stateful_bernoulli) intentionally not applied.

    # One lane-dense matmul against the whole qkv slab: columns [2H:3H] of the
    # result equal p @ V (the attention output); the rest is sliced off by the
    # wrapper. This keeps the MXU N dim and the output store 128 lanes wide
    # (unmasked vst) instead of a 16-lane masked partial store.
    out = jnp.dot(p, qkv, preferred_element_type=jnp.float32)    # (B*T, Np)
    o_ref[...] = out.astype(o_ref.dtype)


def masked_self_attention_head(x, wq, wk, wv):
    """
    x:  (B, T, C) float32
    wq, wk, wv: (C, H) float32  (transposed from PyTorch's (H, C) layout)
    returns: (B, T, H) float32
    """
    B, T, C = x.shape
    H = wq.shape[1]
    BT = B * T
    n_out = max(LANE, ((3 * H + LANE - 1) // LANE) * LANE)  # lane-dense slab width

    # Fused, lane-padded QKV weight slab: [Wq | Wk | Wv | zero-pad] -> (C, n_out).
    wqkv = jnp.zeros((C, n_out), dtype=x.dtype)
    wqkv = wqkv.at[:, 0:H].set(wq)
    wqkv = wqkv.at[:, H:2 * H].set(wk)
    wqkv = wqkv.at[:, 2 * H:3 * H].set(wv)

    # Fold batch into the sublane dim for the projections; the attention itself
    # stays per-batch via the block-diagonal causal mask below.
    x2d = x.reshape(BT, C)
    rows = jnp.arange(BT, dtype=jnp.int32)
    same_batch = (rows[:, None] // T) == (rows[None, :] // T)
    causal = (rows[None, :] % T) <= (rows[:, None] % T)
    mask = (same_batch & causal).astype(jnp.int32)          # (BT, BT)

    kernel = functools.partial(_attention_kernel, head_size=H)

    # Single grid step: at these shapes per-step overhead dwarfs the compute, so
    # collapse everything into one invocation. (For large configs, re-split over
    # query tiles / batch with "parallel" semantics so v7x's 2 TCs both get work;
    # with a single step, weight double-buffering is moot.)
    grid_spec = pltpu.PrefetchScalarGridSpec(
        num_scalar_prefetch=0,
        grid=(1,),
        in_specs=[
            pl.BlockSpec((BT, C), lambda i: (0, 0)),
            pl.BlockSpec((C, n_out), lambda i: (0, 0)),
            pl.BlockSpec((BT, BT), lambda i: (0, 0)),
        ],
        out_specs=pl.BlockSpec((BT, n_out), lambda i: (0, 0)),
    )

    out_pad = pl.pallas_call(
        kernel,
        out_shape=jax.ShapeDtypeStruct((BT, n_out), x.dtype),
        grid_spec=grid_spec,
        compiler_params=pltpu.CompilerParams(
            dimension_semantics=("arbitrary",)),
    )(x2d, wqkv, mask)

    # Columns [2H:3H] of (p @ qkv_slab) are p @ V, i.e. the attention output.
    return out_pad[:, 2 * H:3 * H].reshape(B, T, H)


def reference_attention(x, wq, wk, wv):
    """Pure-JAX reference with identical semantics (eval-mode dropout)."""
    q = x @ wq
    k = x @ wk
    v = x @ wv
    scale = k.shape[-1] ** (-0.5)
    wei = jnp.einsum("bth,bsh->bts", q, k) * scale
    T = x.shape[1]
    tril = jnp.tril(jnp.ones((T, T), dtype=bool))
    wei = jnp.where(tril, wei, -jnp.inf)
    wei = jax.nn.softmax(wei, axis=-1)
    return jnp.einsum("bts,bsh->bth", wei, v)


if __name__ == "__main__":
    # batch B = 2, block_size T = 8, num_input_features C = 32, head_size H = 16
    B, T, C, H = 2, 8, 32, 16

    key = jax.random.PRNGKey(0)
    kx, kq, kk, kv = jax.random.split(key, 4)

    x = jax.random.normal(kx, (B, T, C), dtype=jnp.float32)

    # PyTorch nn.Linear(C, H, bias=False) stores weight of shape (H, C);
    # init like PyTorch (U(-1/sqrt(C), 1/sqrt(C))) and transpose for the kernel.
    bound = 1.0 / (C ** 0.5)
    wq_pt = jax.random.uniform(kq, (H, C), minval=-bound, maxval=bound, dtype=jnp.float32)
    wk_pt = jax.random.uniform(kk, (H, C), minval=-bound, maxval=bound, dtype=jnp.float32)
    wv_pt = jax.random.uniform(kv, (H, C), minval=-bound, maxval=bound, dtype=jnp.float32)

    wq, wk, wv = wq_pt.T, wk_pt.T, wv_pt.T  # (C, H)

    out = masked_self_attention_head(x, wq, wk, wv)
    out = jax.block_until_ready(out)

    ref = reference_attention(x, wq, wk, wv)
    assert out.shape == (B, T, H)
    max_err = float(jnp.max(jnp.abs(out - ref)))
    # Tolerance loosened vs 1e-5 because of pl.reciprocal(approx=True).
    assert jnp.allclose(out, ref, atol=5e-3, rtol=5e-3), f"mismatch vs reference (max err {max_err})"

    print("KERNEL_OK")
</pallas_src>

<mosaic_0001>
module attributes {stable_mosaic.version = 11 : i64} {
  func.func @_attention_kernel(%arg0: i32, %arg1: memref<16x32xf32, #tpu.memory_space<vmem>>, %arg2: memref<32x128xf32, #tpu.memory_space<vmem>>, %arg3: memref<16x16xi32, #tpu.memory_space<vmem>>, %arg4: memref<16x128xf32, #tpu.memory_space<vmem>>) attributes {dimension_semantics = [#tpu.dimension_semantics<arbitrary>], iteration_bounds = array<i64: 1>, scalar_prefetch = 0 : i64, scratch_operands = 0 : i64, tpu.core_type = #tpu.core_type<tc>, window_params = [{pipeline_mode = #tpu.pipeline_mode<synchronous>, transform_indices = @transform_0, window_bounds = array<i64: 16, 32>}, {pipeline_mode = #tpu.pipeline_mode<synchronous>, transform_indices = @transform_1, window_bounds = array<i64: 32, 128>}, {pipeline_mode = #tpu.pipeline_mode<synchronous>, transform_indices = @transform_2, window_bounds = array<i64: 16, 16>}, {pipeline_mode = #tpu.pipeline_mode<synchronous>, transform_indices = @transform_3, window_bounds = array<i64: 16, 128>}]} {
    %c0 = arith.constant 0 : index
    %c0_0 = arith.constant 0 : index
    %0 = vector.load %arg1[%c0, %c0_0] : memref<16x32xf32, #tpu.memory_space<vmem>>, vector<16x32xf32>
    %c0_1 = arith.constant 0 : index
    %c0_2 = arith.constant 0 : index
    %1 = vector.load %arg2[%c0_1, %c0_2] : memref<32x128xf32, #tpu.memory_space<vmem>>, vector<32x128xf32>
    %cst = arith.constant dense<0.000000e+00> : vector<16x128xf32>
    %2 = tpu.matmul %0, %1, %cst {dimension_numbers = #tpu.dot_dimension_numbers<[1], [0], [0], [1], [0, 0, 1, 1], [], []>} : vector<16x32xf32>, vector<32x128xf32>, vector<16x128xf32> -> vector<16x128xf32>
    %3 = vector.extract_strided_slice %2 {offsets = [0, 0], sizes = [16, 16], strides = [1, 1]} : vector<16x128xf32> to vector<16x16xf32>
    %4 = vector.extract_strided_slice %2 {offsets = [0, 16], sizes = [16, 16], strides = [1, 1]} : vector<16x128xf32> to vector<16x16xf32>
    %cst_3 = arith.constant 1.600000e+01 : f32
    %cst_4 = arith.constant -5.000000e-01 : f32
    %5 = math.powf %cst_3, %cst_4 : f32
    %cst_5 = arith.constant dense<0.000000e+00> : vector<16x16xf32>
    %6 = tpu.matmul %3, %4, %cst_5 {dimension_numbers = #tpu.dot_dimension_numbers<[1], [1], [0], [0], [0, 0, 1, 0], [], []>} : vector<16x16xf32>, vector<16x16xf32>, vector<16x16xf32> -> vector<16x16xf32>
    %7 = vector.broadcast %5 : f32 to vector<16x16xf32>
    %8 = arith.mulf %6, %7 : vector<16x16xf32>
    %c0_6 = arith.constant 0 : index
    %c0_7 = arith.constant 0 : index
    %9 = vector.load %arg3[%c0_6, %c0_7] : memref<16x16xi32, #tpu.memory_space<vmem>>, vector<16x16xi32>
    %c0_i32 = arith.constant 0 : i32
    %10 = vector.broadcast %c0_i32 : i32 to vector<16x16xi32>
    %11 = arith.cmpi ne, %9, %10 : vector<16x16xi32>
    %cst_8 = arith.constant 0xFF800000 : f32
    %12 = vector.broadcast %cst_8 : f32 to vector<16x16xf32>
    %13 = arith.select %11, %8, %12 : vector<16x16xi1>, vector<16x16xf32>
    %cst_9 = arith.constant dense<0xFF800000> : vector<16xf32>
    %14 = vector.multi_reduction <maximumf>, %13, %cst_9 [1] : vector<16x16xf32> to vector<16xf32>
    %15 = vector.shape_cast %14 : vector<16xf32> to vector<16x1xf32>
    %16 = vector.broadcast %15 : vector<16x1xf32> to vector<16x16xf32>
    %17 = arith.subf %13, %16 : vector<16x16xf32>
    %18 = math.exp %17 : vector<16x16xf32>
    %cst_10 = arith.constant dense<0.000000e+00> : vector<16xf32>
    %19 = vector.multi_reduction <add>, %18, %cst_10 [1] : vector<16x16xf32> to vector<16xf32>
    %20 = vector.shape_cast %19 : vector<16xf32> to vector<16x1xf32>
    %21 = tpu.reciprocal %20 {approx = true} : vector<16x1xf32> -> vector<16x1xf32>
    %22 = vector.broadcast %21 : vector<16x1xf32> to vector<16x16xf32>
    %23 = arith.mulf %18, %22 : vector<16x16xf32>
    %cst_11 = arith.constant dense<0.000000e+00> : vector<16x128xf32>
    %24 = tpu.matmul %23, %2, %cst_11 {dimension_numbers = #tpu.dot_dimension_numbers<[1], [0], [0], [1], [0, 0, 1, 1], [], []>} : vector<16x16xf32>, vector<16x128xf32>, vector<16x128xf32> -> vector<16x128xf32>
    %c0_12 = arith.constant 0 : index
    %c0_13 = arith.constant 0 : index
    %25 = vector.load %arg4[%c0_12, %c0_13] : memref<16x128xf32, #tpu.memory_space<vmem>>, vector<16x128xf32>
    tpu.vector_store %arg4[%c0_12, %c0_13], %24 {strides = array<i32>} : memref<16x128xf32, #tpu.memory_space<vmem>>, vector<16x128xf32>,
    return
  }
  func.func @transform_0(%arg0: i32) -> (i32, i32) {
    %c0_i32 = arith.constant 0 : i32
    %c0_i32_0 = arith.constant 0 : i32
    %c0_i32_1 = arith.constant 0 : i32
    return %c0_i32, %c0_i32_0 : i32, i32
  }
  func.func @transform_1(%arg0: i32) -> (i32, i32) {
    %c0_i32 = arith.constant 0 : i32
    %c0_i32_0 = arith.constant 0 : i32
    %c0_i32_1 = arith.constant 0 : i32
    return %c0_i32, %c0_i32_0 : i32, i32
  }
  func.func @transform_2(%arg0: i32) -> (i32, i32) {
    %c0_i32 = arith.constant 0 : i32
    %c0_i32_0 = arith.constant 0 : i32
    %c0_i32_1 = arith.constant 0 : i32
    return %c0_i32, %c0_i32_0 : i32, i32
  }
  func.func @transform_3(%arg0: i32) -> (i32, i32) {
    %c0_i32 = arith.constant 0 : i32
    %c0_i32_0 = arith.constant 0 : i32
    %c0_i32_1 = arith.constant 0 : i32
    return %c0_i32, %c0_i32_0 : i32, i32
  }
}

</mosaic_0001>

<bundles_post_ra>
// kernel: tpu_custom_call.1
= control target key start
LH: loop header
LB: loop body
LE: loop exit
PB: predicated region body
PF: predicated region fallthrough
CT: control target
= control target key end

     0   :  { %8 = vsyncpa [#allocation3], 0  ;;  %s648_s0 = inlined_call_operand.hbm [shape: f32[16,32], index: 0, kind: input, shape index: {}]   ;;  %s649_s1 = inlined_call_operand.hbm [shape: f32[32,128], index: 1, kind: input, shape index: {}]   ;;  %s650_s2 = inlined_call_operand.hbm [shape: s32[16,16], index: 2, kind: input, shape index: {}]   ;;  %s651_s3 = inlined_call_operand.hbm [shape: f32[16,128], index: 3, kind: output, shape index: {}]  }
   0x1   :  { %9 = vsyncpa [#allocation6], 0 }
   0x2   :  { %10 = vsyncpa [#allocation4], 0  ;;  %s544_s12 = smov [#allocation5]   ;;  %s545_s14 = smov [#allocation2]  }
   0x3   :  { %s28_s13 = sshll.u32 %s544_s12, 4  ;;  %s16_s15 = sshll.u32 %s545_s14, 4  ;;  %s29_s13 = int_to_ptr.vmem [resolvable:$true] %s28_s13  ;;  %s571_s15 = int_to_ptr.vmem [resolvable:$true] %s16_s15 }
   0x4   :  { %s450_s18 = scalar_lea.hbm %s649_s1, 512 }
   0x5   :  { %p451_p0 = scmp.ne.s32.totalorder %s649_s1, %s450_s18  ;;  %p454_p1 = scmp.lt.u32.totalorder %s450_s18, %s649_s1 }
   0x7   :  { %p456_p2 = pnand %p454_p1, %p451_p0 }
   0x9   :  { %459 = shalt.err (!%p456_p2)
}
   0xa   :  { %s460_s23 = scalar_lea.vmem %s29_s13, 512  ;;  %p465_p4 = scmp.lt.s32.totalorder %s29_s13, %s29_s13 }
   0xb   :  { %p461_p3 = scmp.ne.s32.totalorder %s29_s13, %s460_s23  ;;  %p466_p5 = scmp.lt.s32.totalorder %s460_s23, %s460_s23 }
   0xd   :  { %p467_p6 = por %p466_p5, %p465_p4 }
   0xf   :  { %p468_p7 = pnand %p467_p6, %p461_p3 }
  0x11   :  { %471 = shalt.err (!%p468_p7)
}
  0x12   :  { %s546_s24 = smov 128   ;;  %s547_s25 = smov 8  }
  0x13   :  { %34 = dma.hbm_to_vmem [thread:$0]  %s649_s1, 512, %s29_s13, [#allocation6], %s546_s24, %s546_s24, %s547_s25  }
  0x14   :  { %s472_s30 = scalar_lea.hbm %s648_s0, 256 }
  0x15   :  { %p473_p8 = scmp.ne.s32.totalorder %s648_s0, %s472_s30  ;;  %p476_p9 = scmp.lt.u32.totalorder %s472_s30, %s648_s0 }
  0x17   :  { %p478_p10 = pnand %p476_p9, %p473_p8 }
  0x19   :  { %481 = shalt.err (!%p478_p10)
}
  0x1a   :  { %s482_s8 = scalar_lea.vmem %s571_s15, 256  ;;  %p487_p12 = scmp.lt.s32.totalorder %s571_s15, %s571_s15 }
  0x1b   :  { %p483_p11 = scmp.ne.s32.totalorder %s571_s15, %s482_s8  ;;  %p488_p13 = scmp.lt.s32.totalorder %s482_s8, %s482_s8 }
  0x1d   :  { %p489_p0 = por %p488_p13, %p487_p12 }
  0x1f   :  { %p490_p1 = pnand %p489_p0, %p483_p11 }
  0x21   :  { %493 = shalt.err (!%p490_p1)
}
  0x22   :  { %22 = dma.hbm_to_vmem [thread:$0]  %s648_s0, 256, %s571_s15, [#allocation3], %s546_s24, %s546_s24, %s547_s25  }
  0x23   :  { %s548_s10 = smov [#allocation7]   ;;  %s494_s14 = scalar_lea.hbm %s650_s2, 256 }
  0x24   :  { %s40_s11 = sshll.u32 %s548_s10, 4  ;;  %p495_p2 = scmp.ne.s32.totalorder %s650_s2, %s494_s14  ;;  %s41_s11 = int_to_ptr.vmem [resolvable:$true] %s40_s11 }
  0x25   :  { %p498_p3 = scmp.lt.u32.totalorder %s494_s14, %s650_s2 }
  0x27   :  { %p500_p4 = pnand %p498_p3, %p495_p2 }
  0x29   :  { %503 = shalt.err (!%p500_p4)
}
  0x2a   :  { %s504_s20 = scalar_lea.vmem %s41_s11, 256  ;;  %p509_p6 = scmp.lt.s32.totalorder %s41_s11, %s41_s11 }
  0x2b   :  { %p505_p5 = scmp.ne.s32.totalorder %s41_s11, %s504_s20  ;;  %p510_p7 = scmp.lt.s32.totalorder %s504_s20, %s504_s20 }
  0x2d   :  { %p511_p8 = por %p510_p7, %p509_p6 }
  0x2f   :  { %p512_p9 = pnand %p511_p8, %p505_p5 }
  0x31   :  { %515 = shalt.err (!%p512_p9)
}
  0x32   :  { %46 = dma.hbm_to_vmem [thread:$0]  %s650_s2, 256, %s41_s11, [#allocation6], %s546_s24, %s546_s24, %s547_s25  }
  0x33   :  { %538 = dma.done.wait [#allocation3], 256  }
  0x34   :  { %539 = vsyncadd [#allocation3], 4294967040 }
  0x35   :  { %540 = dma.done.wait [#allocation6], 768  }
  0x36   :  { %541 = vsyncadd [#allocation6], 4294966528  ;;  %vm62_vm0 = vcmask 261120   ;;  %v58_v0 = vld [vmem:[#allocation5] sm:$0xff]  ;;  %v59_v1 = vld [vmem:[#allocation5 + $0x8] sm:$0xff]  ;;  %vm150_vm1 = vcmask 130048  }
  0x37   :  { %v60_v2 = vld [vmem:[#allocation5 + $0x10] sm:$0xff]  ;;  %v412_v3 = vpack.c.bf16 %v59_v1, %v58_v0  ;;  %v61_v4 = vld [vmem:[#allocation5 + $0x18] sm:$0xff]  ;;  %s549_s2 = smov 112   ;;  %vm421_vm2 = vmpackc.low %vm150_vm1, %vm150_vm1  ;;  %s550_s21 = smov [#allocation8]  }
  0x38   :  { %v56_v5 = vld [vmem:[#allocation2] sm:$0xff]  ;;  %v416_v6 = vpack.c.bf16 %v61_v4, %v60_v2  ;;  %v57_v7 = vld [vmem:[#allocation2 + $0x8] sm:$0xff]  ;;  %v237_v16 = vld [vmem:[#allocation7 + $0x8] sm:$0xff]  ;;  %s352_s22 = sshll.u32 %s550_s21, 4  ;;  %s353_s22 = int_to_ptr.vmem [resolvable:$true] %s352_s22 }
  0x39   :  { %395 = vmatprep.mubr.msk.f32.mxu0 %vm62_vm0, %v56_v5  ;;  %413 = vmatprep.subr.bf16.mxu0 %v412_v3  ;;  %v236_v17 = vld [vmem:[#allocation7] sm:$0xff]  ;;  %vm239_vm3 = vcmp.ne.s32.totalorder %v237_v16, 0  ;;  %s516_s23 = scalar_lea.vmem %s353_s22, 256  ;;  %p521_p11 = scmp.lt.s32.totalorder %s353_s22, %s353_s22 }
  0x3a   :  { %415 = vmatpush3.bf16.msra.mxu0 %v412_v3  ;;  %vm238_vm4 = vcmp.ne.s32.totalorder %v236_v17, 0  ;;  %p517_p10 = scmp.ne.s32.totalorder %s353_s22, %s516_s23  ;;  %p522_p12 = scmp.lt.s32.totalorder %s516_s23, %s516_s23 }
  0x3b   :  { %417 = vmatprep.subr.bf16.mxu0 %v416_v6 }
  0x3c   :  { %p523_p13 = por %p522_p12, %p521_p11 }
  0x3e   :  { %419 = vmatpush3.bf16.msra.mxu0 %v416_v6  ;;  %p524_p0 = pnand %p523_p13, %p517_p10 }
  0x41   :  { %396 = vmatmul.mubr.msk.f32.vlgmr.msra.gmra.mrb[0].mxu0 %vm62_vm0, %v57_v7 }
 0x114   :  { %v397_v8 = vpop.f32.mrb[0].mxu0 }
 0x115   :  { %v135_v9 = vpop.f32.mrb[1].mxu0 }
 0x116   :  { %v426_v10 = vpack.c.bf16 %v397_v8, %v135_v9  ;;  %402 = vmatprep.mubr.msk.f32.mxu1 %vm150_vm1, %v135_v9  ;;  %v437_v11 = vpack.i.bf16 %v397_v8, %v135_v9 }
 0x118   :  { %438 = vrot.lane.b32.xlu0 %v437_v11, %s549_s2  ;;  %427 = vmatprep.subr.bf16.mxu0 %v426_v10 }
 0x119   :  { %429 = vmatpush3.bf16.msra.mxu0 %v426_v10 }
 0x18a   :  { %v439_v12 = vpop.permute.xlu0 %438 }
 0x18b   :  { %v441_v13 = vunpack.i.h.bf16 %v439_v12  ;;  %v440_v14 = vunpack.i.l.bf16 %v439_v12 }
 0x18d   :  { %v420_v15 = vpack.c.bf16 %v441_v13, %v440_v14 }
 0x18f   :  { %422 = vmatprep.subr.msk.bf16.mxu1 %vm421_vm2, %v420_v15 }
 0x190   :  { %425 = vmatpush3.bf16.xpose.msk.msra.mxu1 %vm421_vm2, %v420_v15 }
 0x197   :  { %403 = vmatmul.mubr.msk.f32.vlgmr.msra.gmra.mrb[0].mxu1 %vm150_vm1, %v397_v8 }
 0x26a   :  { %v404_v18 = vpop.f32.mrb[0].mxu1 }
 0x26b   :  { %v235_v19 = vmul.f32 0.25, %v404_v18  ;;  %v225_v20 = vpop.f32.mrb[1].mxu1 }
 0x26c   :  { %v234_v21 = vmul.f32 0.25, %v225_v20 }
 0x26d   :  { %v241_v22 = vsel %vm239_vm3, %v235_v19, -inf }
 0x26e   :  { %v245_v23 = vsel %vm150_vm1, %v241_v22, -inf  ;;  %v240_v24 = vsel %vm238_vm4, %v234_v21, -inf }
 0x26f   :  { %246 = vmax.xlane.f32.xlu1 %v245_v23  ;;  %v242_v25 = vsel %vm150_vm1, %v240_v24, -inf }
 0x270   :  { %243 = vmax.xlane.f32.xlu0 %v242_v25 }
 0x2fc   :  { %v247_v26 = vpop.xlane.xlu1 %246 }
 0x2fd   :  { %v249_v27 = vsub.f32 %v241_v22, %v247_v26  ;;  %v244_v28 = vpop.xlane.xlu0 %243 }
 0x2fe   :  { %v248_v29 = vsub.f32 %v240_v24, %v244_v28 }
 0x2ff   :  { %v252_v30 = vmul.f32 1.442695, %v249_v27 }
 0x300   :  { %v250_v31 = vmul.f32 1.442695, %v248_v29 }
 0x302   :  { %442 = vpow2.f32 %v250_v31 }
 0x303   :  { %444 = vpow2.f32 %v252_v30 }
 0x30c   :  { %v443_v32 = vpop.eup %442 }
 0x30d   :  { %v254_v33 = vsel %vm150_vm1, %v443_v32, 0.0  ;;  %v445_v34 = vpop.eup %444 }
 0x30e   :  { %255 = vadd.xlane.f32.xlu1 %v254_v33  ;;  %v257_v35 = vsel %vm150_vm1, %v445_v34, 0.0 }
 0x312   :  { %258 = vadd.xlane.f32.xlu1 %v257_v35 }
 0x39b   :  { %v256_v36 = vpop.xlane.xlu1 %255 }
 0x39c   :  { %446 = vrcp.f32 %v256_v36 }
 0x39f   :  { %v259_v37 = vpop.xlane.xlu1 %258 }
 0x3a0   :  { %448 = vrcp.f32 %v259_v37 }
 0x3a6   :  { %v447_v38 = vpop.eup %446 }
 0x3a7   :  { %v262_v39 = vmul.f32 %v447_v38, %v443_v32 }
 0x3a9   :  { %409 = vmatprep.mubr.msk.f32.mxu0 %vm150_vm1, %v262_v39 }
 0x3aa   :  { %v449_v40 = vpop.eup %448 }
 0x3ab   :  { %v263_v41 = vmul.f32 %v449_v40, %v445_v34 }
 0x3ad   :  { %410 = vmatmul.mubr.msk.f32.vlgmr.msra.gmra.mrb[2].mxu0 %vm150_vm1, %v263_v41 }
 0x480   :  { %v411_v42 = vpop.f32.mrb[2].mxu0 }
 0x481   :  { %346 = vst [vmem:[#allocation8 + $0x8] sm:$0xff] %v411_v42  ;;  %v336_v43 = vpop.f32.mrb[3].mxu0 }
 0x482   :  { %345 = vst [vmem:[#allocation8] sm:$0xff] %v336_v43 }
 0x483   :  { %527 = shalt.err (!%p524_p0)
}
 0x484   :  { %s528_s28 = scalar_lea.hbm %s651_s3, 256 }
 0x485   :  { %p529_p1 = scmp.ne.s32.totalorder %s651_s3, %s528_s28  ;;  %p532_p2 = scmp.lt.u32.totalorder %s528_s28, %s651_s3 }
 0x487   :  { %p534_p3 = pnand %p532_p2, %p529_p1 }
 0x489   :  { %537 = shalt.err (!%p534_p3)
}
 0x48a   :  { %358 = dma.vmem_to_hbm [thread:$0]  %s353_s22, 256, %s651_s3, [#allocation4], %s546_s24, %s546_s24, %s547_s25  }
 0x48b   :  { %542 = dma.done.wait [#allocation4], 256  }
 0x48c   :  { %543 = vsyncadd [#allocation4], 4294967040 }
 0x48d   :  { %362 = vsyncpa [#allocation3], 1 }
 0x48e   :  { %363 = vsyncpa [#allocation6], 1 }
 0x48f   :  { %364 = vsyncpa [#allocation4], 1 }

</bundles_post_ra>
